<compile_context>
chip_gen: v7x
topology: tpu7x:2x2x1
jax: 0.10.0
libtpu: 0.0.40
codegen_flags: <defaults>
</compile_context>

<pallas_src>
import math
from functools import partial

import jax
import jax.numpy as jnp
import numpy as np
from jax.experimental import pallas as pl
from jax.experimental.pallas import tpu as pltpu

BN_EPS = 1e-5
LEAKY_SLOPE = 0.1
_VMEM_LIMIT = 32 * 1024 * 1024      # explicit scoped-VMEM request, safe on v5e/v6e/v7x
_TILE_BYTES = 4 * 1024 * 1024       # streamed bytes (x tile + out tile) per grid step


def _round_up(x, m):
    return ((x + m - 1) // m) * m


def _choose_wide(in_dim, out_dim, cap=16):
    """Row-folding factor so wide*out_dim (and ideally wide*in_dim) is a multiple of 128."""
    w_out = 128 // math.gcd(out_dim, 128)
    if w_out > cap:
        return 1                      # awkward out_dim: give up on lane-dense stores
    w_in = 128 // math.gcd(in_dim, 128)
    w = (w_out * w_in) // math.gcd(w_out, w_in)   # lcm
    return w if w <= cap else w_out


def _choose_tile(m_wide, in_w, out_w, itemsize, override=None):
    """Rows (in the wide layout) per grid step; multiple of 8 or the full extent."""
    if override is not None:
        tm = min(int(override), m_wide)
    else:
        per_row = (in_w + out_w) * itemsize
        tm = max(8, min(4096, _TILE_BYTES // per_row))
    if tm >= m_wide:
        return m_wide                 # single block: block dims == full array dims
    tm = max(8, (tm // 8) * 8)        # keep sublane-aligned tiles
    return m_wide if tm >= m_wide else tm


def _stats_kernel(x_ref, w_ref, sum_ref, sq_ref, *, tm, m_wide, ragged):
    """Pass 1: accumulate per-channel sum / sum-of-squares of z = x @ W."""
    i = pl.program_id(0)

    @pl.when(i == 0)
    def _init():
        sum_ref[...] = jnp.zeros_like(sum_ref)
        sq_ref[...] = jnp.zeros_like(sq_ref)

    z = jnp.dot(x_ref[...], w_ref[...], preferred_element_type=jnp.float32)
    if ragged:
        # Last tile reads past the end of the input; zero those rows' contribution.
        rows = jax.lax.broadcasted_iota(jnp.int32, z.shape, 0) + i * tm
        z = jnp.where(rows < m_wide, z, 0.0)
    sum_ref[...] += jnp.sum(z, axis=0, keepdims=True)
    sq_ref[...] += jnp.sum(z * z, axis=0, keepdims=True)


def _norm_kernel(x_ref, w_ref, scale_ref, shift_ref, o_ref):
    """Pass 2: recompute z = x @ W, fused BN scale/shift + LeakyReLU(0.1)."""
    z = jnp.dot(x_ref[...], w_ref[...], preferred_element_type=jnp.float32)
    y = z * scale_ref[...] + shift_ref[...]
    o_ref[...] = jnp.where(y > 0, y, LEAKY_SLOPE * y).astype(o_ref.dtype)


@partial(jax.jit, static_argnames=("tile_rows",))
def unary_block(x, weight, bias, gamma, beta, *, tile_rows=None):
    """x: (B, N, in_dim); weight: (out_dim, in_dim); bias/gamma/beta: (out_dim,)."""
    B, N, in_dim = x.shape
    out_dim = weight.shape[0]
    M = B * N
    dtype = x.dtype
    itemsize = jnp.dtype(dtype).itemsize
    f32 = jnp.float32

    wide = _choose_wide(in_dim, out_dim)
    in_w, out_w = wide * in_dim, wide * out_dim

    x2 = x.reshape(M, in_dim)
    if M % wide != 0:
        # TODO(synk): this pad copies x once in HBM; only hit when B*N % wide != 0.
        x2 = jnp.pad(x2, ((0, _round_up(M, wide) - M), (0, 0)))
    m_wide = x2.shape[0] // wide
    x_wide = x2.reshape(m_wide, in_w)          # contiguous reshape: free

    tm = _choose_tile(m_wide, in_w, out_w, itemsize, tile_rows)
    n_tiles = pl.cdiv(m_wide, tm)
    ragged = (m_wide % tm) != 0

    # Block-diagonal weight kron(I_wide, W^T): (wide*in_dim, wide*out_dim). Tiny; stays
    # resident in VMEM (constant index_map -> fetched once, reused every grid step).
    w_t = weight.T.astype(f32)
    w_wide = jnp.kron(jnp.eye(wide, dtype=f32), w_t).astype(dtype)

    # ---------- pass 1: per-channel statistics of z = x @ W ----------
    sums, sumsq = pl.pallas_call(
        partial(_stats_kernel, tm=tm, m_wide=m_wide, ragged=ragged),
        out_shape=(jax.ShapeDtypeStruct((1, out_w), f32),
                   jax.ShapeDtypeStruct((1, out_w), f32)),
        grid=(n_tiles,),
        in_specs=[pl.BlockSpec((tm, in_w), lambda i: (i, 0)),
                  pl.BlockSpec((in_w, out_w), lambda i: (0, 0))],
        out_specs=(pl.BlockSpec((1, out_w), lambda i: (0, 0)),
                   pl.BlockSpec((1, out_w), lambda i: (0, 0))),
        compiler_params=pltpu.CompilerParams(
            dimension_semantics=("arbitrary",),          # reduction axis
            vmem_limit_bytes=_VMEM_LIMIT),
    )(x_wide, w_wide)

    # ---------- fold lane groups; BN -> single per-channel scale/shift ----------
    s1 = sums.reshape(wide, out_dim).sum(axis=0)
    s2 = sumsq.reshape(wide, out_dim).sum(axis=0)
    mean_z = s1 / M
    var = jnp.maximum(s2 / M - mean_z * mean_z, 0.0)     # biased var; shift-invariant
    scale = gamma.astype(f32) * jax.lax.rsqrt(var + BN_EPS)
    # y = z + bias; BN(y) = (y - (mean_z + bias)) * scale + beta = z*scale + (beta - mean_z*scale)
    shift = beta.astype(f32) - mean_z * scale
    scale_w = jnp.tile(scale, wide).reshape(1, out_w)
    shift_w = jnp.tile(shift, wide).reshape(1, out_w)

    # ---------- pass 2: recompute matmul, fused BN + LeakyReLU, lane-dense store ----------
    out_wide = pl.pallas_call(
        _norm_kernel,
        out_shape=jax.ShapeDtypeStruct((m_wide, out_w), dtype),
        grid=(n_tiles,),
        in_specs=[pl.BlockSpec((tm, in_w), lambda i: (i, 0)),
                  pl.BlockSpec((in_w, out_w), lambda i: (0, 0)),
                  pl.BlockSpec((1, out_w), lambda i: (0, 0)),
                  pl.BlockSpec((1, out_w), lambda i: (0, 0))],
        out_specs=pl.BlockSpec((tm, out_w), lambda i: (i, 0)),
        compiler_params=pltpu.CompilerParams(
            dimension_semantics=("parallel",),           # independent tiles -> megacore
            vmem_limit_bytes=_VMEM_LIMIT),
    )(x_wide, w_wide, scale_w, shift_w)

    out = out_wide.reshape(m_wide * wide, out_dim)[:M]
    return out.reshape(B, N, out_dim)


def unary_block_ref(x, weight, bias, gamma, beta):
    y = jnp.einsum("bni,oi->bno", x, weight) + bias
    mean = jnp.mean(y, axis=(0, 1), keepdims=True)
    var = jnp.mean((y - mean) ** 2, axis=(0, 1), keepdims=True)
    y = (y - mean) / jnp.sqrt(var + BN_EPS) * gamma + beta
    return jnp.where(y > 0, y, LEAKY_SLOPE * y)


if __name__ == "__main__":
    in_dim, out_dim = 16, 32
    key = jax.random.PRNGKey(0)
    kx, kw, kb, kx2 = jax.random.split(key, 4)

    # nn.Linear init: U(-1/sqrt(in_dim), 1/sqrt(in_dim)); BN weight=1 (bn_weight_init), bias=0
    bound = 1.0 / np.sqrt(in_dim)
    weight = jax.random.uniform(kw, (out_dim, in_dim), minval=-bound, maxval=bound,
                                dtype=jnp.float32)
    bias = jax.random.uniform(kb, (out_dim,), minval=-bound, maxval=bound,
                              dtype=jnp.float32)
    gamma = jnp.ones((out_dim,), dtype=jnp.float32)
    beta = jnp.zeros((out_dim,), dtype=jnp.float32)

    # --- test 1: small canonical shape (single tile path) ---
    B, N = 2, 8
    x = jax.random.normal(kx, (B, N, in_dim), dtype=jnp.float32)
    out = jax.block_until_ready(unary_block(x, weight, bias, gamma, beta))
    ref = unary_block_ref(x, weight, bias, gamma, beta)
    np.testing.assert_allclose(np.asarray(out), np.asarray(ref), rtol=1e-4, atol=1e-4)

    # --- test 2: exercises multi-tile grid + ragged last block + row padding ---
    B2, N2 = 2, 101
    x2 = jax.random.normal(kx2, (B2, N2, in_dim), dtype=jnp.float32)
    out2 = jax.block_until_ready(
        unary_block(x2, weight, bias, gamma, beta, tile_rows=8))
    ref2 = unary_block_ref(x2, weight, bias, gamma, beta)
    np.testing.assert_allclose(np.asarray(out2), np.asarray(ref2), rtol=5e-4, atol=5e-4)

    print("KERNEL_OK")
</pallas_src>

<mosaic_0001>
module attributes {stable_mosaic.version = 11 : i64} {
  func.func @_stats_kernel(%arg0: i32, %arg1: memref<2x128xf32, #tpu.memory_space<vmem>>, %arg2: memref<128x256xf32, #tpu.memory_space<vmem>>, %arg3: memref<1x256xf32, #tpu.memory_space<vmem>>, %arg4: memref<1x256xf32, #tpu.memory_space<vmem>>) attributes {dimension_semantics = [#tpu.dimension_semantics<arbitrary>], iteration_bounds = array<i64: 1>, scalar_prefetch = 0 : i64, scratch_operands = 0 : i64, tpu.core_type = #tpu.core_type<tc>, window_params = [{transform_indices = @transform_0, window_bounds = array<i64: 2, 128>}, {pipeline_mode = #tpu.pipeline_mode<synchronous>, transform_indices = @transform_1, window_bounds = array<i64: 128, 256>}, {pipeline_mode = #tpu.pipeline_mode<synchronous>, transform_indices = @transform_2, window_bounds = array<i64: 1, 256>}, {pipeline_mode = #tpu.pipeline_mode<synchronous>, transform_indices = @transform_3, window_bounds = array<i64: 1, 256>}]} {
    %c0_i32 = arith.constant 0 : i32
    %0 = arith.cmpi eq, %arg0, %c0_i32 : i32
    %1 = arith.extui %0 : i1 to i32
    %c0_i32_0 = arith.constant 0 : i32
    %2 = arith.cmpi ne, %1, %c0_i32_0 : i32
    scf.if %2 {
      %cst_14 = arith.constant 0.000000e+00 : f32
      %17 = vector.broadcast %cst_14 : f32 to vector<1x256xf32>
      %c0_15 = arith.constant 0 : index
      %c0_16 = arith.constant 0 : index
      %18 = vector.load %arg3[%c0_15, %c0_16] : memref<1x256xf32, #tpu.memory_space<vmem>>, vector<1x256xf32>
      tpu.vector_store %arg3[%c0_15, %c0_16], %17 {strides = array<i32>} : memref<1x256xf32, #tpu.memory_space<vmem>>, vector<1x256xf32>,
      %cst_17 = arith.constant 0.000000e+00 : f32
      %19 = vector.broadcast %cst_17 : f32 to vector<1x256xf32>
      %c0_18 = arith.constant 0 : index
      %c0_19 = arith.constant 0 : index
      %20 = vector.load %arg4[%c0_18, %c0_19] : memref<1x256xf32, #tpu.memory_space<vmem>>, vector<1x256xf32>
      tpu.vector_store %arg4[%c0_18, %c0_19], %19 {strides = array<i32>} : memref<1x256xf32, #tpu.memory_space<vmem>>, vector<1x256xf32>,
    } else {
    }
    %c0 = arith.constant 0 : index
    %c0_1 = arith.constant 0 : index
    %3 = vector.load %arg1[%c0, %c0_1] : memref<2x128xf32, #tpu.memory_space<vmem>>, vector<2x128xf32>
    %c0_2 = arith.constant 0 : index
    %c0_3 = arith.constant 0 : index
    %4 = vector.load %arg2[%c0_2, %c0_3] : memref<128x256xf32, #tpu.memory_space<vmem>>, vector<128x256xf32>
    %cst = arith.constant dense<0.000000e+00> : vector<2x256xf32>
    %5 = tpu.matmul %3, %4, %cst {dimension_numbers = #tpu.dot_dimension_numbers<[1], [0], [0], [1], [0, 0, 1, 1], [], []>} : vector<2x128xf32>, vector<128x256xf32>, vector<2x256xf32> -> vector<2x256xf32>
    %c0_4 = arith.constant 0 : index
    %c0_5 = arith.constant 0 : index
    %6 = vector.load %arg3[%c0_4, %c0_5] : memref<1x256xf32, #tpu.memory_space<vmem>>, vector<1x256xf32>
    %cst_6 = arith.constant dense<0.000000e+00> : vector<256xf32>
    %7 = vector.multi_reduction <add>, %5, %cst_6 [0] : vector<2x256xf32> to vector<256xf32>
    %8 = vector.shape_cast %7 : vector<256xf32> to vector<1x256xf32>
    %9 = arith.addf %6, %8 : vector<1x256xf32>
    %c0_7 = arith.constant 0 : index
    %c0_8 = arith.constant 0 : index
    %10 = vector.load %arg3[%c0_7, %c0_8] : memref<1x256xf32, #tpu.memory_space<vmem>>, vector<1x256xf32>
    tpu.vector_store %arg3[%c0_7, %c0_8], %9 {strides = array<i32>} : memref<1x256xf32, #tpu.memory_space<vmem>>, vector<1x256xf32>,
    %c0_9 = arith.constant 0 : index
    %c0_10 = arith.constant 0 : index
    %11 = vector.load %arg4[%c0_9, %c0_10] : memref<1x256xf32, #tpu.memory_space<vmem>>, vector<1x256xf32>
    %12 = arith.mulf %5, %5 : vector<2x256xf32>
    %cst_11 = arith.constant dense<0.000000e+00> : vector<256xf32>
    %13 = vector.multi_reduction <add>, %12, %cst_11 [0] : vector<2x256xf32> to vector<256xf32>
    %14 = vector.shape_cast %13 : vector<256xf32> to vector<1x256xf32>
    %15 = arith.addf %11, %14 : vector<1x256xf32>
    %c0_12 = arith.constant 0 : index
    %c0_13 = arith.constant 0 : index
    %16 = vector.load %arg4[%c0_12, %c0_13] : memref<1x256xf32, #tpu.memory_space<vmem>>, vector<1x256xf32>
    tpu.vector_store %arg4[%c0_12, %c0_13], %15 {strides = array<i32>} : memref<1x256xf32, #tpu.memory_space<vmem>>, vector<1x256xf32>,
    return
  }
  func.func @transform_0(%arg0: i32) -> (i32, i32) {
    %c0_i32 = arith.constant 0 : i32
    %c0_i32_0 = arith.constant 0 : i32
    return %arg0, %c0_i32 : i32, i32
  }
  func.func @transform_1(%arg0: i32) -> (i32, i32) {
    %c0_i32 = arith.constant 0 : i32
    %c0_i32_0 = arith.constant 0 : i32
    %c0_i32_1 = arith.constant 0 : i32
    return %c0_i32, %c0_i32_0 : i32, i32
  }
  func.func @transform_2(%arg0: i32) -> (i32, i32) {
    %c0_i32 = arith.constant 0 : i32
    %c0_i32_0 = arith.constant 0 : i32
    %c0_i32_1 = arith.constant 0 : i32
    return %c0_i32, %c0_i32_0 : i32, i32
  }
  func.func @transform_3(%arg0: i32) -> (i32, i32) {
    %c0_i32 = arith.constant 0 : i32
    %c0_i32_0 = arith.constant 0 : i32
    %c0_i32_1 = arith.constant 0 : i32
    return %c0_i32, %c0_i32_0 : i32, i32
  }
}

module attributes {stable_mosaic.version = 11 : i64} {
  func.func @_norm_kernel(%arg0: i32, %arg1: memref<2x128xf32, #tpu.memory_space<vmem>>, %arg2: memref<128x256xf32, #tpu.memory_space<vmem>>, %arg3: memref<1x256xf32, #tpu.memory_space<vmem>>, %arg4: memref<1x256xf32, #tpu.memory_space<vmem>>, %arg5: memref<2x256xf32, #tpu.memory_space<vmem>>) attributes {dimension_semantics = [#tpu.dimension_semantics<parallel>], iteration_bounds = array<i64: 1>, scalar_prefetch = 0 : i64, scratch_operands = 0 : i64, tpu.core_type = #tpu.core_type<tc>, window_params = [{transform_indices = @transform_0, window_bounds = array<i64: 2, 128>}, {pipeline_mode = #tpu.pipeline_mode<synchronous>, transform_indices = @transform_1, window_bounds = array<i64: 128, 256>}, {pipeline_mode = #tpu.pipeline_mode<synchronous>, transform_indices = @transform_2, window_bounds = array<i64: 1, 256>}, {pipeline_mode = #tpu.pipeline_mode<synchronous>, transform_indices = @transform_3, window_bounds = array<i64: 1, 256>}, {transform_indices = @transform_4, window_bounds = array<i64: 2, 256>}]} {
    %c0 = arith.constant 0 : index
    %c0_0 = arith.constant 0 : index
    %0 = vector.load %arg1[%c0, %c0_0] : memref<2x128xf32, #tpu.memory_space<vmem>>, vector<2x128xf32>
    %c0_1 = arith.constant 0 : index
    %c0_2 = arith.constant 0 : index
    %1 = vector.load %arg2[%c0_1, %c0_2] : memref<128x256xf32, #tpu.memory_space<vmem>>, vector<128x256xf32>
    %cst = arith.constant dense<0.000000e+00> : vector<2x256xf32>
    %2 = tpu.matmul %0, %1, %cst {dimension_numbers = #tpu.dot_dimension_numbers<[1], [0], [0], [1], [0, 0, 1, 1], [], []>} : vector<2x128xf32>, vector<128x256xf32>, vector<2x256xf32> -> vector<2x256xf32>
    %c0_3 = arith.constant 0 : index
    %c0_4 = arith.constant 0 : index
    %3 = vector.load %arg3[%c0_3, %c0_4] : memref<1x256xf32, #tpu.memory_space<vmem>>, vector<1x256xf32>
    %4 = vector.broadcast %3 : vector<1x256xf32> to vector<2x256xf32>
    %5 = arith.mulf %2, %4 : vector<2x256xf32>
    %c0_5 = arith.constant 0 : index
    %c0_6 = arith.constant 0 : index
    %6 = vector.load %arg4[%c0_5, %c0_6] : memref<1x256xf32, #tpu.memory_space<vmem>>, vector<1x256xf32>
    %7 = vector.broadcast %6 : vector<1x256xf32> to vector<2x256xf32>
    %8 = arith.addf %5, %7 : vector<2x256xf32>
    %cst_7 = arith.constant 0.000000e+00 : f32
    %9 = vector.broadcast %cst_7 : f32 to vector<2x256xf32>
    %10 = arith.cmpf ogt, %8, %9 : vector<2x256xf32>
    %cst_8 = arith.constant 1.000000e-01 : f32
    %11 = vector.broadcast %cst_8 : f32 to vector<2x256xf32>
    %12 = arith.mulf %11, %8 : vector<2x256xf32>
    %13 = arith.select %10, %8, %12 : vector<2x256xi1>, vector<2x256xf32>
    %c0_9 = arith.constant 0 : index
    %c0_10 = arith.constant 0 : index
    %14 = vector.load %arg5[%c0_9, %c0_10] : memref<2x256xf32, #tpu.memory_space<vmem>>, vector<2x256xf32>
    tpu.vector_store %arg5[%c0_9, %c0_10], %13 {strides = array<i32>} : memref<2x256xf32, #tpu.memory_space<vmem>>, vector<2x256xf32>,
    return
  }
  func.func @transform_0(%arg0: i32) -> (i32, i32) {
    %c0_i32 = arith.constant 0 : i32
    %c0_i32_0 = arith.constant 0 : i32
    return %arg0, %c0_i32 : i32, i32
  }
  func.func @transform_1(%arg0: i32) -> (i32, i32) {
    %c0_i32 = arith.constant 0 : i32
    %c0_i32_0 = arith.constant 0 : i32
    %c0_i32_1 = arith.constant 0 : i32
    return %c0_i32, %c0_i32_0 : i32, i32
  }
  func.func @transform_2(%arg0: i32) -> (i32, i32) {
    %c0_i32 = arith.constant 0 : i32
    %c0_i32_0 = arith.constant 0 : i32
    %c0_i32_1 = arith.constant 0 : i32
    return %c0_i32, %c0_i32_0 : i32, i32
  }
  func.func @transform_3(%arg0: i32) -> (i32, i32) {
    %c0_i32 = arith.constant 0 : i32
    %c0_i32_0 = arith.constant 0 : i32
    %c0_i32_1 = arith.constant 0 : i32
    return %c0_i32, %c0_i32_0 : i32, i32
  }
  func.func @transform_4(%arg0: i32) -> (i32, i32) {
    %c0_i32 = arith.constant 0 : i32
    %c0_i32_0 = arith.constant 0 : i32
    return %arg0, %c0_i32 : i32, i32
  }
}

</mosaic_0001>

<bundles_post_ra>
// kernel: tile.13
= control target key start
LH: loop header
LB: loop body
LE: loop exit
PB: predicated region body
PF: predicated region fallthrough
CT: control target
= control target key end

     0   :  { %s22_s0 = inlined_call_operand.vmem [shape: f32[32], index: 0, kind: input, shape index: {}]   ;;  %s23_s1 = inlined_call_operand.vmem [shape: f32[8,32], index: 1, kind: output, shape index: {}]  }
   0x1   :  { %v4_v0 = vld [vmem:[%s22_s0] ss:$0 sm:$0xff] }
   0x2   :  { %5 = vst [vmem:[%s23_s1] sm:$0xff] %v4_v0 }

// kernel: tile.14
= control target key start
LH: loop header
LB: loop body
LE: loop exit
PB: predicated region body
PF: predicated region fallthrough
CT: control target
= control target key end

     0   :  { %s7_s6 = smov 3  ;;  %s14_s9 = smov 3  ;;  %vm4_vm0 = vcmask 261120   ;;  %vm11_vm1 = vcmask 1048320   ;;  %vm18_vm2 = vcmask 785920   ;;  %vm25_vm3 = vcmask 523520   ;;  %s76_s0 = inlined_call_operand.vmem [shape: f32[8,32], index: 0, kind: input, shape index: {}]   ;;  %s77_s1 = inlined_call_operand.vmem [shape: f32[1,256], index: 1, kind: output, shape index: {}]  }
   0x1   :  { %v38_v0 = vld [vmem:[%s76_s0 + $0x3] ss:$4 sm:%s7_s6]   ;;  %s45_s10 = smov 96   ;;  %s21_s11 = smov 3  ;;  %v39_v1 = vld [vmem:[%s76_s0 + $0x2] ss:$4 sm:%s14_s9]  }
   0x2   :  { %9 = vrot.lane.b32.xlu0 %v38_v0, %s45_s10  ;;  %v40_v2 = vld [vmem:[%s76_s0 + $0x1] ss:$4 sm:%s21_s11]   ;;  %s2_s16 = smov 3  ;;  %s46_s17 = smov 32  }
   0x3   :  { %23 = vrot.lane.b32.xlu1 %v40_v2, %s46_s17  ;;  %v3_v3 = vld [vmem:[%s76_s0] ss:$4 sm:%s2_s16]   ;;  %s47_s0 = smov 64  }
   0x4   :  { %5 = vst.msk [vmem:[#allocation0] ss:$8 sm:$0x3] %vm4_vm0, %v3_v3  }
   0x6   :  { %16 = vrot.lane.b32.xlu0 %v39_v1, %s47_s0 }
  0x74   :  { %v10_v4 = vpop.permute.xlu0 %9  }
  0x75   :  { %12 = vst.msk [vmem:[#allocation0] ss:$8 sm:$0x3] %vm11_vm1, %v10_v4   ;;  %v24_v5 = vpop.permute.xlu1 %23  }
  0x78   :  { %v17_v6 = vpop.permute.xlu0 %16  }
  0x79   :  { %19 = vst.msk [vmem:[#allocation0] ss:$8 sm:$0x3] %vm18_vm2, %v17_v6  }
  0x7a   :  { %26 = vst.msk [vmem:[#allocation0] ss:$8 sm:$0x3] %vm25_vm3, %v24_v5  }
  0x81   :  { %v30_v7 = vld [vmem:[#allocation0] sm:$0x1]  ;;  %v34_v8 = vld [vmem:[#allocation0 + $0x8] sm:$0x1] }
  0x82   :  { %32 = vst [vmem:[%s77_s1] sm:$0x1] %v30_v7  ;;  %41 = vst [vmem:[%s77_s1 + $0x1] sm:$0x1] %v34_v8 }

// kernel: unary_block.2
= control target key start
LH: loop header
LB: loop body
LE: loop exit
PB: predicated region body
PF: predicated region fallthrough
CT: control target
= control target key end

     0   :  { %v17_v0 = vlaneseq  ;;  %v246_v4 = vmov 0.0   ;;  %vm128_vm1 = vcmask 1041408   ;;  %s399_s1 = inlined_call_operand.vmem [shape: f32[128,256], index: 1, kind: input, shape index: {}]   ;;  %s400_s2 = inlined_call_operand.vmem [shape: f32[1,256], index: 2, kind: output, shape index: {0}]   ;;  %s401_s3 = inlined_call_operand.vmem [shape: f32[1,256], index: 3, kind: output, shape index: {1}]   ;;  %s402_s0 = inlined_call_operand.vmem [shape: f32[2,128], index: 0, kind: input, shape index: {}]  }
   0x1   :  { %v25_v1 = vld [vmem:[%s399_s1 + $0x8] sm:$0xff]  ;;  %v27_v2 = vld [vmem:[%s399_s1 + $0x18] sm:$0xff]  ;;  %v24_v3 = vld [vmem:[%s399_s1] sm:$0xff]  ;;  %120 = vmatprep.mubr.f32.mxu0 %v246_v4 }
   0x2   :  { %v212_v5 = vpack.c.bf16 %v27_v2, %v25_v1  ;;  %v26_v6 = vld [vmem:[%s399_s1 + $0x10] sm:$0xff]  ;;  %v29_v7 = vld [vmem:[%s399_s1 + $0x28] sm:$0xff]  ;;  %v31_v8 = vld [vmem:[%s399_s1 + $0x38] sm:$0xff]  ;;  %vm287_vm0 = vcmp.lt.s32.totalorder %v17_v0, 256  ;;  %v247_v1 = vmov 1966171168  }
   0x3   :  { %v214_v10 = vpack.c.bf16 %v26_v6, %v24_v3  ;;  %v216_v11 = vpack.c.bf16 %v31_v8, %v29_v7  ;;  %v28_v12 = vld [vmem:[%s399_s1 + $0x20] sm:$0xff]  ;;  %v30_v13 = vld [vmem:[%s399_s1 + $0x30] sm:$0xff]  ;;  %v33_v14 = vld [vmem:[%s399_s1 + $0x48] sm:$0xff]  ;;  %21 = vst.msk [vmem:[%s400_s2] sm:$0x3] %vm287_vm0, %v246_v4  ;;  %v147_v2 = vunpack.c.l.s4 %v247_v1 }
   0x4   :  { %22 = vst.msk [vmem:[%s401_s3] sm:$0x3] %vm287_vm0, %v246_v4  ;;  %213 = vmatprep.subr.bf16.mxu0 %v212_v5  ;;  %v35_v15 = vld [vmem:[%s399_s1 + $0x58] sm:$0xff]  ;;  %v218_v16 = vpack.c.bf16 %v30_v13, %v28_v12  ;;  %v32_v18 = vld [vmem:[%s399_s1 + $0x40] sm:$0xff]  ;;  %v34_v19 = vld [vmem:[%s399_s1 + $0x50] sm:$0xff]  ;;  %v150_v13 = vshrl.u32 %v17_v0, 7 }
   0x5   :  { %215 = vmatpush1.bf16.msra.mxu0 %v214_v10  ;;  %v220_v17 = vpack.c.bf16 %v35_v15, %v33_v14  ;;  %v37_v20 = vld [vmem:[%s399_s1 + $0x68] sm:$0xff]  ;;  %v39_v21 = vld [vmem:[%s399_s1 + $0x78] sm:$0xff]  ;;  %v222_v22 = vpack.c.bf16 %v34_v19, %v32_v18  ;;  %v36_v24 = vld [vmem:[%s399_s1 + $0x60] sm:$0xff]  ;;  %v148_v12 = vunpack.c.0.s8 %v147_v2 }
   0x6   :  { %217 = vmatprep.subr.bf16.mxu0 %v216_v11  ;;  %v224_v23 = vpack.c.bf16 %v39_v21, %v37_v20  ;;  %v38_v25 = vld [vmem:[%s399_s1 + $0x70] sm:$0xff]  ;;  %v41_v26 = vld [vmem:[%s399_s1 + $0x88] sm:$0xff]  ;;  %v43_v27 = vld [vmem:[%s399_s1 + $0x98] sm:$0xff] }
   0x7   :  { %v226_v28 = vpack.c.bf16 %v38_v25, %v36_v24  ;;  %v228_v29 = vpack.c.bf16 %v43_v27, %v41_v26  ;;  %v40_v30 = vld [vmem:[%s399_s1 + $0x80] sm:$0xff]  ;;  %v42_v31 = vld [vmem:[%s399_s1 + $0x90] sm:$0xff]  ;;  %v45_v32 = vld [vmem:[%s399_s1 + $0xa8] sm:$0xff] }
   0x8   :  { %v47_v33 = vld [vmem:[%s399_s1 + $0xb8] sm:$0xff]  ;;  %v230_v34 = vpack.c.bf16 %v42_v31, %v40_v30  ;;  %v44_v36 = vld [vmem:[%s399_s1 + $0xa0] sm:$0xff]  ;;  %v46_v37 = vld [vmem:[%s399_s1 + $0xb0] sm:$0xff] }
   0x9   :  { %219 = vmatpush1.bf16.msra.mxu0 %v218_v16  ;;  %v232_v35 = vpack.c.bf16 %v47_v33, %v45_v32  ;;  %v49_v38 = vld [vmem:[%s399_s1 + $0xc8] sm:$0xff]  ;;  %v51_v39 = vld [vmem:[%s399_s1 + $0xd8] sm:$0xff]  ;;  %v234_v40 = vpack.c.bf16 %v46_v37, %v44_v36  ;;  %v48_v42 = vld [vmem:[%s399_s1 + $0xc0] sm:$0xff] }
   0xa   :  { %221 = vmatprep.subr.bf16.mxu0 %v220_v17  ;;  %v236_v41 = vpack.c.bf16 %v51_v39, %v49_v38  ;;  %v50_v43 = vld [vmem:[%s399_s1 + $0xd0] sm:$0xff]  ;;  %v53_v44 = vld [vmem:[%s399_s1 + $0xe8] sm:$0xff]  ;;  %v55_v45 = vld [vmem:[%s399_s1 + $0xf8] sm:$0xff] }
   0xb   :  { %v238_v46 = vpack.c.bf16 %v50_v43, %v48_v42  ;;  %v240_v47 = vpack.c.bf16 %v55_v45, %v53_v44  ;;  %v52_v48 = vld [vmem:[%s399_s1 + $0xe0] sm:$0xff]  ;;  %v54_v49 = vld [vmem:[%s399_s1 + $0xf0] sm:$0xff] }
   0xc   :  { %v242_v50 = vpack.c.bf16 %v54_v49, %v52_v48  ;;  %v23_v51 = vld [vmem:[%s402_s0] sm:$0x3] }
   0xd   :  { %223 = vmatpush1.bf16.msra.mxu0 %v222_v22  ;;  %v151_v22 = vsub.s32 %v148_v12, %v150_v13  ;;  %v127_v0 = vld [vmem:[%s400_s2] sm:$0x3] }
   0xe   :  { %225 = vmatprep.subr.bf16.mxu0 %v224_v23  ;;  %v167_v32 = vld [vmem:[%s401_s3] sm:$0x3] }
  0x11   :  { %227 = vmatpush1.bf16.msra.mxu0 %v226_v28 }
  0x12   :  { %229 = vmatprep.subr.bf16.mxu0 %v228_v29 }
  0x15   :  { %231 = vmatpush1.bf16.msra.mxu0 %v230_v34 }
  0x16   :  { %233 = vmatprep.subr.bf16.mxu0 %v232_v35 }
  0x19   :  { %235 = vmatpush1.bf16.msra.mxu0 %v234_v40 }
  0x1a   :  { %237 = vmatprep.subr.bf16.mxu0 %v236_v41 }
  0x1d   :  { %239 = vmatpush1.bf16.msra.mxu0 %v238_v46 }
  0x1e   :  { %241 = vmatprep.subr.bf16.mxu0 %v240_v47 }
  0x21   :  { %243 = vmatpush1.bf16.msra.mxu0 %v242_v50 }
  0x24   :  { %121 = vmatmul.mubr.f32.vlgmr.msra.gmra.mrb[0].mxu0 %v23_v51 }
  0xf7   :  { %v122_v52 = vpop.f32.mrb[0].mxu0 }
  0xf8   :  { %v129_v53 = vsel %vm128_vm1, %v122_v52, 0.0  ;;  %v168_v54 = vmul.f32 %v122_v52, %v122_v52  ;;  %v124_v55 = vpop.f32.mrb[1].mxu0 }
  0xf9   :  { %v130_v56 = vrot.slane %v129_v53, 4  ;;  %v136_v57 = vsel %vm128_vm1, %v124_v55, 0.0  ;;  %v169_v58 = vmul.f32 %v124_v55, %v124_v55 }
  0xfa   :  { %v170_v59 = vsel %vm128_vm1, %v168_v54, 0.0  ;;  %v137_v60 = vrot.slane %v136_v57, 4 }
  0xfb   :  { %v131_v61 = vadd.f32 %v130_v56, %v129_v53  ;;  %v171_v62 = vrot.slane %v170_v59, 4  ;;  %v177_v63 = vsel %vm128_vm1, %v169_v58, 0.0 }
  0xfc   :  { %v138_v3 = vadd.f32 %v137_v60, %v136_v57  ;;  %v178_v4 = vrot.slane %v177_v63, 4 }
  0xfd   :  { %v132_v5 = vrot.slane %v131_v61, 2  ;;  %v172_v6 = vadd.f32 %v171_v62, %v170_v59 }
  0xfe   :  { %v139_v7 = vrot.slane %v138_v3, 2  ;;  %v179_v8 = vadd.f32 %v178_v4, %v177_v63 }
  0xff   :  { %v133_v10 = vadd.f32 %v132_v5, %v131_v61  ;;  %v173_v11 = vrot.slane %v172_v6, 2 }
 0x100   :  { %v140_v14 = vadd.f32 %v139_v7, %v138_v3  ;;  %v180_v15 = vrot.slane %v179_v8, 2 }
 0x101   :  { %v134_v16 = vrot.slane %v133_v10, 1  ;;  %v174_v17 = vadd.f32 %v173_v11, %v172_v6 }
 0x102   :  { %v141_v18 = vrot.slane %v140_v14, 1  ;;  %v181_v19 = vadd.f32 %v180_v15, %v179_v8 }
 0x103   :  { %v135_v20 = vadd.f32 %v134_v16, %v133_v10  ;;  %v175_v21 = vrot.slane %v174_v17, 1 }
 0x104   :  { %v142_v23 = vadd.f32 %v141_v18, %v140_v14  ;;  %v182_v24 = vrot.slane %v181_v19, 1 }
 0x105   :  { %v176_v25 = vadd.f32 %v175_v21, %v174_v17 }
 0x106   :  { %v145_v26 = vcombine.low %v135_v20, %v142_v23  ;;  %v183_v27 = vadd.f32 %v182_v24, %v181_v19 }
 0x108   :  { %v152_v28 = vrot.slane %v145_v26, %v151_v22  ;;  %v186_v29 = vcombine.low %v176_v25, %v183_v27 }
 0x10a   :  { %v159_v30 = vrot.slane %v152_v28, %v151_v22  ;;  %v193_v31 = vrot.slane %v186_v29, %v151_v22 }
 0x10c   :  { %v161_v33 = vadd.f32 %v159_v30, %v127_v0  ;;  %v200_v34 = vrot.slane %v193_v31, %v151_v22 }
 0x10e   :  { %166 = vst.msk [vmem:[%s400_s2] sm:$0x3] %vm287_vm0, %v161_v33  ;;  %v202_v35 = vadd.f32 %v200_v34, %v167_v32 }
 0x110   :  { %203 = vst.msk [vmem:[%s401_s3] sm:$0x3] %vm287_vm0, %v202_v35 }

// kernel: unary_block.3
= control target key start
LH: loop header
LB: loop body
LE: loop exit
PB: predicated region body
PF: predicated region fallthrough
CT: control target
= control target key end

     0   :  { %v205_v3 = vmov 0.0   ;;  %v123_v50 = vlaneseq  ;;  %s339_s1 = inlined_call_operand.vmem [shape: f32[128,256], index: 1, kind: input, shape index: {}]   ;;  %s340_s0 = inlined_call_operand.vmem [shape: f32[2,128], index: 0, kind: input, shape index: {}]   ;;  %s341_s2 = inlined_call_operand.vmem [shape: f32[1,256], index: 2, kind: input, shape index: {}]   ;;  %s342_s3 = inlined_call_operand.vmem [shape: f32[1,256], index: 3, kind: input, shape index: {}]   ;;  %s343_s4 = inlined_call_operand.vmem [shape: f32[2,256], index: 4, kind: output, shape index: {}]  }
   0x1   :  { %v19_v0 = vld [vmem:[%s339_s1 + $0x8] sm:$0xff]  ;;  %v21_v1 = vld [vmem:[%s339_s1 + $0x18] sm:$0xff]  ;;  %v18_v2 = vld [vmem:[%s339_s1] sm:$0xff]  ;;  %114 = vmatprep.mubr.f32.mxu0 %v205_v3 }
   0x2   :  { %v172_v4 = vpack.c.bf16 %v21_v1, %v19_v0  ;;  %v20_v5 = vld [vmem:[%s339_s1 + $0x10] sm:$0xff]  ;;  %v23_v6 = vld [vmem:[%s339_s1 + $0x28] sm:$0xff]  ;;  %v25_v7 = vld [vmem:[%s339_s1 + $0x38] sm:$0xff]  ;;  %v124_v51 = vshrl.u32 %v123_v50, 7 }
   0x3   :  { %v174_v8 = vpack.c.bf16 %v20_v5, %v18_v2  ;;  %v176_v9 = vpack.c.bf16 %v25_v7, %v23_v6  ;;  %v22_v10 = vld [vmem:[%s339_s1 + $0x20] sm:$0xff]  ;;  %v24_v11 = vld [vmem:[%s339_s1 + $0x30] sm:$0xff]  ;;  %v27_v12 = vld [vmem:[%s339_s1 + $0x48] sm:$0xff] }
   0x4   :  { %173 = vmatprep.subr.bf16.mxu0 %v172_v4  ;;  %v29_v13 = vld [vmem:[%s339_s1 + $0x58] sm:$0xff]  ;;  %v178_v14 = vpack.c.bf16 %v24_v11, %v22_v10  ;;  %v26_v16 = vld [vmem:[%s339_s1 + $0x40] sm:$0xff]  ;;  %v28_v17 = vld [vmem:[%s339_s1 + $0x50] sm:$0xff]  ;;  %v125_v52 = vsub.s32 0, %v124_v51  ;;  %v129_v54 = vsub.s32 1, %v124_v51 }
   0x5   :  { %175 = vmatpush1.bf16.msra.mxu0 %v174_v8  ;;  %v180_v15 = vpack.c.bf16 %v29_v13, %v27_v12  ;;  %v31_v18 = vld [vmem:[%s339_s1 + $0x68] sm:$0xff]  ;;  %v33_v19 = vld [vmem:[%s339_s1 + $0x78] sm:$0xff]  ;;  %v182_v20 = vpack.c.bf16 %v28_v17, %v26_v16  ;;  %v30_v22 = vld [vmem:[%s339_s1 + $0x60] sm:$0xff] }
   0x6   :  { %177 = vmatprep.subr.bf16.mxu0 %v176_v9  ;;  %v184_v21 = vpack.c.bf16 %v33_v19, %v31_v18  ;;  %v32_v23 = vld [vmem:[%s339_s1 + $0x70] sm:$0xff]  ;;  %v35_v24 = vld [vmem:[%s339_s1 + $0x88] sm:$0xff]  ;;  %v37_v25 = vld [vmem:[%s339_s1 + $0x98] sm:$0xff] }
   0x7   :  { %v186_v26 = vpack.c.bf16 %v32_v23, %v30_v22  ;;  %v188_v27 = vpack.c.bf16 %v37_v25, %v35_v24  ;;  %v34_v28 = vld [vmem:[%s339_s1 + $0x80] sm:$0xff]  ;;  %v36_v29 = vld [vmem:[%s339_s1 + $0x90] sm:$0xff]  ;;  %v39_v30 = vld [vmem:[%s339_s1 + $0xa8] sm:$0xff] }
   0x8   :  { %v41_v31 = vld [vmem:[%s339_s1 + $0xb8] sm:$0xff]  ;;  %v190_v32 = vpack.c.bf16 %v36_v29, %v34_v28  ;;  %v38_v34 = vld [vmem:[%s339_s1 + $0xa0] sm:$0xff]  ;;  %v40_v35 = vld [vmem:[%s339_s1 + $0xb0] sm:$0xff] }
   0x9   :  { %179 = vmatpush1.bf16.msra.mxu0 %v178_v14  ;;  %v192_v33 = vpack.c.bf16 %v41_v31, %v39_v30  ;;  %v43_v36 = vld [vmem:[%s339_s1 + $0xc8] sm:$0xff]  ;;  %v45_v37 = vld [vmem:[%s339_s1 + $0xd8] sm:$0xff]  ;;  %v194_v38 = vpack.c.bf16 %v40_v35, %v38_v34  ;;  %v42_v40 = vld [vmem:[%s339_s1 + $0xc0] sm:$0xff] }
   0xa   :  { %181 = vmatprep.subr.bf16.mxu0 %v180_v15  ;;  %v196_v39 = vpack.c.bf16 %v45_v37, %v43_v36  ;;  %v44_v41 = vld [vmem:[%s339_s1 + $0xd0] sm:$0xff]  ;;  %v47_v42 = vld [vmem:[%s339_s1 + $0xe8] sm:$0xff]  ;;  %v49_v43 = vld [vmem:[%s339_s1 + $0xf8] sm:$0xff] }
   0xb   :  { %v198_v44 = vpack.c.bf16 %v44_v41, %v42_v40  ;;  %v200_v45 = vpack.c.bf16 %v49_v43, %v47_v42  ;;  %v46_v46 = vld [vmem:[%s339_s1 + $0xe0] sm:$0xff]  ;;  %v48_v47 = vld [vmem:[%s339_s1 + $0xf0] sm:$0xff] }
   0xc   :  { %v202_v48 = vpack.c.bf16 %v48_v47, %v46_v46  ;;  %v17_v49 = vld [vmem:[%s340_s0] sm:$0x3] }
   0xd   :  { %183 = vmatpush1.bf16.msra.mxu0 %v182_v20  ;;  %v121_v53 = vld [vmem:[%s341_s2] sm:$0x3] }
   0xe   :  { %185 = vmatprep.subr.bf16.mxu0 %v184_v21  ;;  %v135_v55 = vld [vmem:[%s342_s3] sm:$0x3]  ;;  %v126_v56 = vrot.slane %v121_v53, %v125_v52  ;;  %v130_v57 = vrot.slane %v121_v53, %v129_v54 }
   0xf   :  { %v140_v58 = vrot.slane %v135_v55, %v125_v52  ;;  %v144_v60 = vrot.slane %v135_v55, %v129_v54 }
  0x11   :  { %187 = vmatpush1.bf16.msra.mxu0 %v186_v26 }
  0x12   :  { %189 = vmatprep.subr.bf16.mxu0 %v188_v27 }
  0x15   :  { %191 = vmatpush1.bf16.msra.mxu0 %v190_v32 }
  0x16   :  { %193 = vmatprep.subr.bf16.mxu0 %v192_v33 }
  0x19   :  { %195 = vmatpush1.bf16.msra.mxu0 %v194_v38 }
  0x1a   :  { %197 = vmatprep.subr.bf16.mxu0 %v196_v39 }
  0x1d   :  { %199 = vmatpush1.bf16.msra.mxu0 %v198_v44 }
  0x1e   :  { %201 = vmatprep.subr.bf16.mxu0 %v200_v45 }
  0x21   :  { %203 = vmatpush1.bf16.msra.mxu0 %v202_v48 }
  0x24   :  { %115 = vmatmul.mubr.f32.vlgmr.msra.gmra.mrb[0].mxu0 %v17_v49 }
  0xf7   :  { %v116_v59 = vpop.f32.mrb[0].mxu0 }
  0xf8   :  { %v133_v61 = vmul.f32 %v126_v56, %v116_v59  ;;  %v118_v62 = vpop.f32.mrb[1].mxu0 }
  0xf9   :  { %v134_v63 = vmul.f32 %v130_v57, %v118_v62 }
  0xfa   :  { %v147_v0 = vadd.f32 %v140_v58, %v133_v61 }
  0xfb   :  { %v148_v1 = vadd.f32 %v144_v60, %v134_v63 }
  0xfc   :  { %vm149_vm0 = vcmp.gt.f32.partialorder %v147_v0, 0.0  ;;  %v151_v2 = vmul.f32 0.1, %v147_v0 }
  0xfd   :  { %vm150_vm1 = vcmp.gt.f32.partialorder %v148_v1, 0.0  ;;  %v152_v3 = vmul.f32 0.1, %v148_v1 }
  0xfe   :  { %v153_v4 = vsel %vm149_vm0, %v147_v0, %v151_v2 }
  0xff   :  { %v154_v5 = vsel %vm150_vm1, %v148_v1, %v152_v3 }
 0x100   :  { %v157_v6 = vcombine.low %v153_v4, %v154_v5 }
 0x102   :  { %171 = vst.sshfl [vmem:[%s343_s4] sm:$0x33 pattern:$0x76325410] %v157_v6 }

</bundles_post_ra>
